<compile_context>
chip_gen: v7x
topology: tpu7x:2x2x1
jax: 0.10.0
libtpu: 0.0.40
codegen_flags: <defaults>
</compile_context>

<pallas_src>
import jax
import jax.numpy as jnp
from jax.experimental import pallas as pl
from jax.experimental.pallas import tpu as pltpu

_EPS = 1e-6


def _layernorm_f32(x):
    # One-pass stats: the two lane reductions are independent (can overlap).
    mean = jnp.mean(x, axis=-1, keepdims=True)
    meansq = jnp.mean(x * x, axis=-1, keepdims=True)
    var = meansq - mean * mean
    return (x - mean) * jax.lax.rsqrt(var + _EPS)


def _t2i_final_kernel(x_ref, mods_ref, w_ref, b_ref, o_ref):
    # Unmasked path: LN -> modulate -> linear.
    # x_ref: (1, TN, C), mods_ref: (1, 2, C), w_ref: (C, Dp), b_ref: (1, Dp),
    # o_ref: (1, TN, Dp).
    x = x_ref[0].astype(jnp.float32)                 # (TN, C)
    mods = mods_ref[0]                               # (2, C)
    sh, sc = mods[0:1, :], mods[1:2, :]
    y = _layernorm_f32(x) * (1.0 + sc) + sh          # (TN, C)
    out = jnp.dot(y.astype(w_ref.dtype), w_ref[...],
                  preferred_element_type=jnp.float32)
    o_ref[0] = (out + b_ref[...]).astype(o_ref.dtype)


def _t2i_final_masked_kernel(x_ref, mods_ref, mask_ref, w_ref, b_ref, o_ref):
    # Masked path. mods_ref: (1, 4, C) packing [shift, scale, shift0, scale0].
    x = x_ref[0].astype(jnp.float32)                 # (TN, C)
    mods = mods_ref[0]                               # (4, C)
    sh, sc = mods[0:1, :], mods[1:2, :]
    sh0, sc0 = mods[2:3, :], mods[3:4, :]

    y = _layernorm_f32(x) * (1.0 + sc) + sh          # (TN, C)  -- "t" branch
    # Faithful to the module: the t0 branch normalizes the *modulated* y.
    y0 = _layernorm_f32(y) * (1.0 + sc0) + sh0       # (TN, C)  -- "t0" branch

    m = mask_ref[0]                                  # (TN, 1)
    z = jnp.where(m > 0, y, y0)                      # (TN, C)

    out = jnp.dot(z.astype(w_ref.dtype), w_ref[...],
                  preferred_element_type=jnp.float32)
    o_ref[0] = (out + b_ref[...]).astype(o_ref.dtype)


def t2i_final_layer(x, t, scale_shift_table, weight, bias,
                    x_mask=None, t0=None, T=None, S=None,
                    *, token_tile=512, matmul_dtype=jnp.bfloat16):
    """Pallas implementation of T2IFinalLayer.forward.

    x:      (B, N, C) with N = T*S
    t:      (B, C)
    scale_shift_table: (2, C)
    weight: (C, Dout), bias: (Dout,)   (transposed vs. torch nn.Linear layout)
    x_mask: optional (B, T) bool, t0: optional (B, C)
    """
    B, N, C = x.shape
    C_w, Dout = weight.shape
    assert C_w == C

    # --- lane-dense output: pad Dout up to a multiple of 128 ---------------
    dpad = (-Dout) % 128
    Dout_p = Dout + dpad
    w = weight if dpad == 0 else jnp.pad(weight, ((0, 0), (0, dpad)))
    b2 = (bias if dpad == 0 else jnp.pad(bias, (0, dpad)))
    b2 = b2[None, :].astype(jnp.float32)             # (1, Dout_p)
    if matmul_dtype is not None:
        w = w.astype(matmul_dtype)                   # bf16 weight for the MXU

    # --- token tiling -------------------------------------------------------
    tn = N if N <= token_tile else token_tile
    if tn < N:
        assert tn % 8 == 0, "token tile must be sublane-aligned"
    grid_n = pl.cdiv(N, tn)

    # --- per-batch modulation vectors (f32) ---------------------------------
    shift = (scale_shift_table[0][None, :] + t).astype(jnp.float32)   # (B, C)
    scale = (scale_shift_table[1][None, :] + t).astype(jnp.float32)   # (B, C)

    x_spec = pl.BlockSpec((1, tn, C), lambda b, n: (b, n, 0))
    w_spec = pl.BlockSpec((C, Dout_p), lambda b, n: (0, 0))
    b_spec = pl.BlockSpec((1, Dout_p), lambda b, n: (0, 0))
    o_spec = pl.BlockSpec((1, tn, Dout_p), lambda b, n: (b, n, 0))

    common = dict(
        out_shape=jax.ShapeDtypeStruct((B, N, Dout_p), x.dtype),
        compiler_params=pltpu.CompilerParams(
            dimension_semantics=("parallel", "parallel"),
            vmem_limit_bytes=48 * 1024 * 1024,
        ),
    )

    if x_mask is None:
        mods = jnp.stack([shift, scale], axis=1)                      # (B, 2, C)
        mods_spec = pl.BlockSpec((1, 2, C), lambda b, n: (b, 0, 0))
        out = pl.pallas_call(
            _t2i_final_kernel,
            grid_spec=pltpu.PrefetchScalarGridSpec(
                num_scalar_prefetch=0,
                grid=(B, grid_n),
                in_specs=[x_spec, mods_spec, w_spec, b_spec],
                out_specs=o_spec),
            **common,
        )(x, mods, w, b2)
    else:
        assert t0 is not None and T is not None and S is not None
        shift0 = (scale_shift_table[0][None, :] + t0).astype(jnp.float32)
        scale0 = (scale_shift_table[1][None, :] + t0).astype(jnp.float32)
        mods = jnp.stack([shift, scale, shift0, scale0], axis=1)      # (B, 4, C)
        mods_spec = pl.BlockSpec((1, 4, C), lambda b, n: (b, 0, 0))
        # Frame mask (B, T) -> token mask (B, N, 1); token n belongs to frame n // S.
        mask_tok = jnp.repeat(x_mask.astype(jnp.float32), S, axis=1)[:, :, None]
        mask_spec = pl.BlockSpec((1, tn, 1), lambda b, n: (b, n, 0))
        out = pl.pallas_call(
            _t2i_final_masked_kernel,
            grid_spec=pltpu.PrefetchScalarGridSpec(
                num_scalar_prefetch=0,
                grid=(B, grid_n),
                in_specs=[x_spec, mods_spec, mask_spec, w_spec, b_spec],
                out_specs=o_spec),
            **common,
        )(x, mods, mask_tok, w, b2)

    return out[..., :Dout] if dpad else out


def _reference(x, t, scale_shift_table, weight, bias, x_mask, t0, T, S,
               matmul_dtype=jnp.bfloat16):
    """Pure-JAX reference mirroring the PyTorch forward (incl. the t0-branch
    re-normalization of the already-modulated activations)."""
    def ln(v):
        mu = jnp.mean(v, axis=-1, keepdims=True)
        var = jnp.mean((v - mu) ** 2, axis=-1, keepdims=True)
        return (v - mu) / jnp.sqrt(var + _EPS)

    def mod(v, sh, sc):
        return v * (1.0 + sc) + sh

    ss = scale_shift_table[None] + t[:, None]            # (B, 2, C)
    sh, sc = ss[:, 0:1], ss[:, 1:2]
    y = mod(ln(x), sh, sc)
    if x_mask is not None:
        ss0 = scale_shift_table[None] + t0[:, None]
        sh0, sc0 = ss0[:, 0:1], ss0[:, 1:2]
        y0 = mod(ln(y), sh0, sc0)                        # norm of modulated x
        B, N, C = x.shape
        y = jnp.where(x_mask[:, :, None, None],
                      y.reshape(B, T, S, C),
                      y0.reshape(B, T, S, C)).reshape(B, N, C)
    if matmul_dtype is not None:
        out = jnp.dot(y.astype(matmul_dtype), weight.astype(matmul_dtype),
                      preferred_element_type=jnp.float32)
    else:
        out = y @ weight
    return out + bias


if __name__ == "__main__":
    key = jax.random.PRNGKey(0)
    B = 2
    hidden_size = 32
    T, S = 2, 8
    N = T * S
    num_patch = 4
    out_channels = 8
    Dout = num_patch * out_channels

    k = jax.random.split(key, 6)
    x = jax.random.normal(k[0], (B, N, hidden_size), dtype=jnp.float32)
    t = jax.random.normal(k[1], (B, hidden_size), dtype=jnp.float32)
    t0 = jax.random.normal(k[2], (B, hidden_size), dtype=jnp.float32)
    # scale_shift_table ~ randn(2, hidden) / sqrt(hidden)
    scale_shift_table = (jax.random.normal(k[3], (2, hidden_size), dtype=jnp.float32)
                         / jnp.sqrt(jnp.float32(hidden_size)))
    # Linear params (synthetic init); weight stored (C, Dout).
    weight = jax.random.normal(k[4], (hidden_size, Dout), dtype=jnp.float32) * 0.02
    bias = jax.random.normal(k[5], (Dout,), dtype=jnp.float32) * 0.02
    x_mask = jnp.array([[True, False], [False, True]])   # exercise both branches

    # Masked path.
    out_masked = t2i_final_layer(x, t, scale_shift_table, weight, bias,
                                 x_mask=x_mask, t0=t0, T=T, S=S)
    out_masked = jax.block_until_ready(out_masked)
    ref_masked = _reference(x, t, scale_shift_table, weight, bias,
                            x_mask, t0, T, S)

    # Unmasked path.
    out_plain = t2i_final_layer(x, t, scale_shift_table, weight, bias)
    out_plain = jax.block_until_ready(out_plain)
    ref_plain = _reference(x, t, scale_shift_table, weight, bias,
                           None, None, T, S)

    assert out_masked.shape == (B, N, Dout)
    assert out_plain.shape == (B, N, Dout)
    assert jnp.allclose(out_masked, ref_masked, atol=5e-3, rtol=5e-3)
    assert jnp.allclose(out_plain, ref_plain, atol=5e-3, rtol=5e-3)
    print("KERNEL_OK")
</pallas_src>

<mosaic_0001>
module attributes {stable_mosaic.version = 11 : i64} {
  func.func @_t2i_final_masked_kernel(%arg0: i32, %arg1: i32, %arg2: memref<1x16x32xf32, #tpu.memory_space<vmem>>, %arg3: memref<1x4x32xf32, #tpu.memory_space<vmem>>, %arg4: memref<1x16x1xf32, #tpu.memory_space<vmem>>, %arg5: memref<32x128xbf16, #tpu.memory_space<vmem>>, %arg6: memref<1x128xf32, #tpu.memory_space<vmem>>, %arg7: memref<1x16x128xf32, #tpu.memory_space<vmem>>) attributes {dimension_semantics = [#tpu.dimension_semantics<parallel>, #tpu.dimension_semantics<parallel>], iteration_bounds = array<i64: 2, 1>, scalar_prefetch = 0 : i64, scratch_operands = 0 : i64, tpu.core_type = #tpu.core_type<tc>, window_params = [{transform_indices = @transform_0, window_bounds = array<i64: 1, 16, 32>}, {transform_indices = @transform_1, window_bounds = array<i64: 1, 4, 32>}, {transform_indices = @transform_2, window_bounds = array<i64: 1, 16, 1>}, {pipeline_mode = #tpu.pipeline_mode<synchronous>, transform_indices = @transform_3, window_bounds = array<i64: 32, 128>}, {pipeline_mode = #tpu.pipeline_mode<synchronous>, transform_indices = @transform_4, window_bounds = array<i64: 1, 128>}, {transform_indices = @transform_5, window_bounds = array<i64: 1, 16, 128>}]} {
    %c0 = arith.constant 0 : index
    %c0_0 = arith.constant 0 : index
    %c0_1 = arith.constant 0 : index
    %0 = vector.load %arg2[%c0, %c0_0, %c0_1] : memref<1x16x32xf32, #tpu.memory_space<vmem>>, vector<1x16x32xf32>
    %1 = vector.shape_cast %0 : vector<1x16x32xf32> to vector<16x32xf32>
    %c0_2 = arith.constant 0 : index
    %c0_3 = arith.constant 0 : index
    %c0_4 = arith.constant 0 : index
    %2 = vector.load %arg3[%c0_2, %c0_3, %c0_4] : memref<1x4x32xf32, #tpu.memory_space<vmem>>, vector<1x4x32xf32>
    %3 = vector.shape_cast %2 : vector<1x4x32xf32> to vector<4x32xf32>
    %4 = vector.extract_strided_slice %3 {offsets = [0, 0], sizes = [1, 32], strides = [1, 1]} : vector<4x32xf32> to vector<1x32xf32>
    %5 = vector.extract_strided_slice %3 {offsets = [1, 0], sizes = [1, 32], strides = [1, 1]} : vector<4x32xf32> to vector<1x32xf32>
    %6 = vector.extract_strided_slice %3 {offsets = [2, 0], sizes = [1, 32], strides = [1, 1]} : vector<4x32xf32> to vector<1x32xf32>
    %7 = vector.extract_strided_slice %3 {offsets = [3, 0], sizes = [1, 32], strides = [1, 1]} : vector<4x32xf32> to vector<1x32xf32>
    %cst = arith.constant dense<0.000000e+00> : vector<16xf32>
    %8 = vector.multi_reduction <add>, %1, %cst [1] : vector<16x32xf32> to vector<16xf32>
    %9 = vector.shape_cast %8 : vector<16xf32> to vector<16x1xf32>
    %cst_5 = arith.constant 3.200000e+01 : f32
    %10 = vector.broadcast %cst_5 : f32 to vector<16x1xf32>
    %11 = arith.divf %9, %10 : vector<16x1xf32>
    %12 = arith.mulf %1, %1 : vector<16x32xf32>
    %cst_6 = arith.constant dense<0.000000e+00> : vector<16xf32>
    %13 = vector.multi_reduction <add>, %12, %cst_6 [1] : vector<16x32xf32> to vector<16xf32>
    %14 = vector.shape_cast %13 : vector<16xf32> to vector<16x1xf32>
    %cst_7 = arith.constant 3.200000e+01 : f32
    %15 = vector.broadcast %cst_7 : f32 to vector<16x1xf32>
    %16 = arith.divf %14, %15 : vector<16x1xf32>
    %17 = arith.mulf %11, %11 : vector<16x1xf32>
    %18 = arith.subf %16, %17 : vector<16x1xf32>
    %19 = vector.broadcast %11 : vector<16x1xf32> to vector<16x32xf32>
    %20 = arith.subf %1, %19 : vector<16x32xf32>
    %cst_8 = arith.constant 9.99999997E-7 : f32
    %21 = vector.broadcast %cst_8 : f32 to vector<16x1xf32>
    %22 = arith.addf %18, %21 : vector<16x1xf32>
    %23 = math.rsqrt %22 : vector<16x1xf32>
    %24 = vector.broadcast %23 : vector<16x1xf32> to vector<16x32xf32>
    %25 = arith.mulf %20, %24 : vector<16x32xf32>
    %cst_9 = arith.constant 1.000000e+00 : f32
    %26 = vector.broadcast %cst_9 : f32 to vector<1x32xf32>
    %27 = arith.addf %26, %5 : vector<1x32xf32>
    %28 = vector.broadcast %27 : vector<1x32xf32> to vector<16x32xf32>
    %29 = arith.mulf %25, %28 : vector<16x32xf32>
    %30 = vector.broadcast %4 : vector<1x32xf32> to vector<16x32xf32>
    %31 = arith.addf %29, %30 : vector<16x32xf32>
    %cst_10 = arith.constant dense<0.000000e+00> : vector<16xf32>
    %32 = vector.multi_reduction <add>, %31, %cst_10 [1] : vector<16x32xf32> to vector<16xf32>
    %33 = vector.shape_cast %32 : vector<16xf32> to vector<16x1xf32>
    %cst_11 = arith.constant 3.200000e+01 : f32
    %34 = vector.broadcast %cst_11 : f32 to vector<16x1xf32>
    %35 = arith.divf %33, %34 : vector<16x1xf32>
    %36 = arith.mulf %31, %31 : vector<16x32xf32>
    %cst_12 = arith.constant dense<0.000000e+00> : vector<16xf32>
    %37 = vector.multi_reduction <add>, %36, %cst_12 [1] : vector<16x32xf32> to vector<16xf32>
    %38 = vector.shape_cast %37 : vector<16xf32> to vector<16x1xf32>
    %cst_13 = arith.constant 3.200000e+01 : f32
    %39 = vector.broadcast %cst_13 : f32 to vector<16x1xf32>
    %40 = arith.divf %38, %39 : vector<16x1xf32>
    %41 = arith.mulf %35, %35 : vector<16x1xf32>
    %42 = arith.subf %40, %41 : vector<16x1xf32>
    %43 = vector.broadcast %35 : vector<16x1xf32> to vector<16x32xf32>
    %44 = arith.subf %31, %43 : vector<16x32xf32>
    %cst_14 = arith.constant 9.99999997E-7 : f32
    %45 = vector.broadcast %cst_14 : f32 to vector<16x1xf32>
    %46 = arith.addf %42, %45 : vector<16x1xf32>
    %47 = math.rsqrt %46 : vector<16x1xf32>
    %48 = vector.broadcast %47 : vector<16x1xf32> to vector<16x32xf32>
    %49 = arith.mulf %44, %48 : vector<16x32xf32>
    %cst_15 = arith.constant 1.000000e+00 : f32
    %50 = vector.broadcast %cst_15 : f32 to vector<1x32xf32>
    %51 = arith.addf %50, %7 : vector<1x32xf32>
    %52 = vector.broadcast %51 : vector<1x32xf32> to vector<16x32xf32>
    %53 = arith.mulf %49, %52 : vector<16x32xf32>
    %54 = vector.broadcast %6 : vector<1x32xf32> to vector<16x32xf32>
    %55 = arith.addf %53, %54 : vector<16x32xf32>
    %c0_16 = arith.constant 0 : index
    %c0_17 = arith.constant 0 : index
    %c0_18 = arith.constant 0 : index
    %56 = vector.load %arg4[%c0_16, %c0_17, %c0_18] : memref<1x16x1xf32, #tpu.memory_space<vmem>>, vector<1x16x1xf32>
    %57 = vector.shape_cast %56 : vector<1x16x1xf32> to vector<16x1xf32>
    %cst_19 = arith.constant 0.000000e+00 : f32
    %58 = vector.broadcast %cst_19 : f32 to vector<16x1xf32>
    %59 = arith.cmpf ogt, %57, %58 : vector<16x1xf32>
    %60 = vector.shape_cast %59 : vector<16x1xi1> to vector<16x1xi1>
    %61 = vector.broadcast %60 : vector<16x1xi1> to vector<16x32xi1>
    %62 = arith.select %61, %31, %55 : vector<16x32xi1>, vector<16x32xf32>
    %63 = arith.truncf %62 : vector<16x32xf32> to vector<16x32xbf16>
    %c0_20 = arith.constant 0 : index
    %c0_21 = arith.constant 0 : index
    %64 = vector.load %arg5[%c0_20, %c0_21] : memref<32x128xbf16, #tpu.memory_space<vmem>>, vector<32x128xbf16>
    %cst_22 = arith.constant dense<0.000000e+00> : vector<16x128xf32>
    %65 = tpu.matmul %63, %64, %cst_22 {dimension_numbers = #tpu.dot_dimension_numbers<[1], [0], [0], [1], [0, 0, 1, 1], [], []>} : vector<16x32xbf16>, vector<32x128xbf16>, vector<16x128xf32> -> vector<16x128xf32>
    %c0_23 = arith.constant 0 : index
    %c0_24 = arith.constant 0 : index
    %66 = vector.load %arg6[%c0_23, %c0_24] : memref<1x128xf32, #tpu.memory_space<vmem>>, vector<1x128xf32>
    %67 = vector.broadcast %66 : vector<1x128xf32> to vector<16x128xf32>
    %68 = arith.addf %65, %67 : vector<16x128xf32>
    %c0_25 = arith.constant 0 : index
    %c0_26 = arith.constant 0 : index
    %c0_27 = arith.constant 0 : index
    %69 = vector.load %arg7[%c0_25, %c0_26, %c0_27] : memref<1x16x128xf32, #tpu.memory_space<vmem>>, vector<1x16x128xf32>
    %70 = vector.shape_cast %69 : vector<1x16x128xf32> to vector<16x128xf32>
    %71 = vector.shape_cast %68 : vector<16x128xf32> to vector<1x16x128xf32>
    tpu.vector_store %arg7[%c0_25, %c0_26, %c0_27], %71 {strides = array<i32>} : memref<1x16x128xf32, #tpu.memory_space<vmem>>, vector<1x16x128xf32>,
    return
  }
  func.func @transform_0(%arg0: i32, %arg1: i32) -> (i32, i32, i32) {
    %c0_i32 = arith.constant 0 : i32
    %c0_i32_0 = arith.constant 0 : i32
    return %arg0, %arg1, %c0_i32 : i32, i32, i32
  }
  func.func @transform_1(%arg0: i32, %arg1: i32) -> (i32, i32, i32) {
    %c0_i32 = arith.constant 0 : i32
    %c0_i32_0 = arith.constant 0 : i32
    %c0_i32_1 = arith.constant 0 : i32
    return %arg0, %c0_i32, %c0_i32_0 : i32, i32, i32
  }
  func.func @transform_2(%arg0: i32, %arg1: i32) -> (i32, i32, i32) {
    %c0_i32 = arith.constant 0 : i32
    %c0_i32_0 = arith.constant 0 : i32
    return %arg0, %arg1, %c0_i32 : i32, i32, i32
  }
  func.func @transform_3(%arg0: i32, %arg1: i32) -> (i32, i32) {
    %c0_i32 = arith.constant 0 : i32
    %c0_i32_0 = arith.constant 0 : i32
    %c0_i32_1 = arith.constant 0 : i32
    return %c0_i32, %c0_i32_0 : i32, i32
  }
  func.func @transform_4(%arg0: i32, %arg1: i32) -> (i32, i32) {
    %c0_i32 = arith.constant 0 : i32
    %c0_i32_0 = arith.constant 0 : i32
    %c0_i32_1 = arith.constant 0 : i32
    return %c0_i32, %c0_i32_0 : i32, i32
  }
  func.func @transform_5(%arg0: i32, %arg1: i32) -> (i32, i32, i32) {
    %c0_i32 = arith.constant 0 : i32
    %c0_i32_0 = arith.constant 0 : i32
    return %arg0, %arg1, %c0_i32 : i32, i32, i32
  }
}

</mosaic_0001>

<bundles_post_ra>
// kernel: tpu_custom_call.1
= control target key start
LH: loop header
LB: loop body
LE: loop exit
PB: predicated region body
PF: predicated region fallthrough
CT: control target
= control target key end

     0   :  { %10 = vsyncpa [#allocation3], 0  ;;  %s1227_s0 = inlined_call_operand.vmem [shape: f32[2,16,32], index: 0, kind: input, shape index: {}]   ;;  %s1228_s1 = inlined_call_operand.hbm [shape: f32[2,4,32], index: 1, kind: input, shape index: {}]   ;;  %s1229_s2 = inlined_call_operand.vmem [shape: f32[2,16,1], index: 2, kind: input, shape index: {}]   ;;  %s1230_s3 = inlined_call_operand.hbm [shape: bf16[32,128], index: 3, kind: input, shape index: {}]   ;;  %s1231_s4 = inlined_call_operand.vmem [shape: f32[1,128], index: 4, kind: input, shape index: {}]   ;;  %s1232_s5 = inlined_call_operand.hbm [shape: f32[2,16,128], index: 5, kind: output, shape index: {}]  }
   0x1   :  { %12 = vsyncpa [#allocation3 + $0x1], 0 }
   0x2   :  { %13 = vsyncpa [#allocation6], 0 }
   0x3   :  { %14 = vsyncpa [#allocation4], 0 }
   0x4   :  { %16 = vsyncpa [#allocation4 + $0x1], 0  ;;  %s981_s18 = smov 0   ;;  %s983_s19 = smov 0  }
   0x5   :  { %s985_s20 = smov 0   ;;  %s987_s21 = smov 0  }
   0x6   :  { %s989_s22 = smov 0   ;;  %s991_s23 = smov 0  }
   0x7 LB: > { %s665_s24 = sadd.s32 4294967295, %s939_s23   ;;  %s666_s25 = sadd.s32 4294967294, %s939_s23   ;;  %s939_s23 = sphi %s991_s23, %s22_s23   ;;  %s935_s22 = sphi %s989_s22, %s1256_s22   ;;  %s931_s21 = sphi %s987_s21, %s1255_s21   ;;  %s927_s20 = sphi %s985_s20, %s1254_s20   ;;  %s923_s19 = sphi %s983_s19, %s1253_s19   ;;  %s919_s18 = sphi %s981_s18, %s1252_s18  }
   0x8   : > { %p82_p0 = scmp.ne.s32.totalorder %s923_s19, %s919_s18  ;;  %p1015_p1 = scmp.eq.s32.totalorder %s665_s24, 0 }
   0x9   : > { %p1019_p2 = scmp.eq.s32.totalorder %s665_s24, 1  ;;  %p184_p3 = scmp.eq.s32.totalorder %s666_s25, 1 }
   0xa   : > { %s1237_s26 = scalar_select %p1015_p1, 1, 0 }
   0xb   : > { %s1238_s27 = scalar_select %p1019_p2, 1, 0 }
   0xc   : > { %p1025_p4 = por %p1015_p1, %p82_p0  ;;  %p667_p5 = scmp.ge.s32.totalorder %s939_s23, 1 }
   0xd   : > { %p1030_p6 = por %p184_p3, %p82_p0  ;;  %p191_p7 = scmp.lt.s32.totalorder %s939_s23, 3 }
   0xe   : > { %s1239_s28 = scalar_select %p1025_p4, 1, 0 }
   0xf   : > { %s1240_s29 = scalar_select %p1030_p6, 1, 0 }
  0x10   : > { %p1035_p8 = pnand %p667_p5, %p191_p7  ;;  %s941_s6 = smov [#allocation5]  }
  0x11   : > { %s203_s7 = sshll.u32 %s941_s6, 4  ;;  %s34_s9 = sadd.s32 1, %s935_s22  ;;  %s204_s7 = int_to_ptr.vmem [resolvable:$true] %s203_s7 }
  0x12   : > { %s1241_s30 = scalar_select %p1035_p8, 1, 0 }
  0x13   : > { %p711_p9 = pneg %p1035_p8  ;;  %s795_s12 = scalar_lea.hbm %s1230_s3, 256 }
  0x14   : > { %p796_p12 = scmp.ne.s32.totalorder %s1230_s3, %s795_s12  ;;  %p802_p5 = scmp.lt.u32.totalorder %s795_s12, %s1230_s3 }
  0x15   : > { %p1044_p11 = pnand %p711_p9, %p1015_p1 }
  0x17   : > { %p797_p13 = pneg %p1044_p11 }
  0x19   : > { %p798_p0 = pnand %p797_p13, %p796_p12 }
  0x1b   : > { %p799_p3 = pneg %p798_p0 }
  0x1d   : > { %p804_p7 = pnand %p802_p5, %p799_p3 }
  0x1f   : > { %807 = shalt.err (!%p804_p7)
}
  0x20   : > { %s808_s17 = scalar_lea.vmem %s204_s7, 256  ;;  %p816_p1 = scmp.lt.s32.totalorder %s204_s7, %s204_s7 }
  0x21   : > { %p809_p9 = scmp.ne.s32.totalorder %s204_s7, %s808_s17  ;;  %p817_p4 = scmp.lt.s32.totalorder %s808_s17, %s808_s17 }
  0x23   : > { %p811_p10 = pnand %p809_p9, %p797_p13  ;;  %p818_p8 = por %p817_p4, %p816_p1 }
  0x25   : > { %p812_p6 = pneg %p811_p10 }
  0x27   : > { %p819_p2 = pnand %p818_p8, %p812_p6 }
  0x29   : > { %822 = shalt.err (!%p819_p2)
}
  0x2a   : > { %s942_s24 = smov 64   ;;  %s943_s25 = smov 4  }
  0x2b   : > { %714 = dma.hbm_to_vmem [thread:$0]  (!%p1044_p11), %s1230_s3, 256, %s204_s7, [#allocation6], %s942_s24, %s942_s24, %s943_s25  }
  0x2c   : > { %p36_p1 = scmp.ge.s32.totalorder %s34_s9, 2  ;;  %s69_s11 = sadd.s32 1, %s927_s20 }
  0x2d   : > { %p76_p2 = scmp.ne.s32.totalorder %s927_s20, %s923_s19  ;;  %p77_p4 = scmp.eq.s32.totalorder %s939_s23, 0 }
  0x2e   : > { %s1258_s9 = smov (%p36_p1, %s34_s9), 0  ;;  %p1244_p8 = scmp.ne.s32.totalorder %s1238_s27, 0 }
  0x2f   : > { %p1071_p6 = por %p77_p4, %p76_p2  ;;  %s66_s8 = ssub.s32 %s935_s22, %s1258_s9 }
  0x30   : > { %p1077_p10 = por %p1244_p8, %p76_p2  ;;  %p724_p12 = scmp.lt.s32.totalorder %s939_s23, 2 }
  0x31   : > { %p67_p11 = scmp.eq.s32.totalorder %s66_s8, 0  ;;  %s233_s7 = sand.u32 1, %s927_s20  }
  0x32   : > { %s670_s14 = sshll.u32 %s233_s7, 2  ;;  %s671_s16 = sshll.u32 %s935_s22, 6 }
  0x33   : > { %s1086_s15 = scalar_select %p67_p11, %s927_s20, %s69_s11  }
  0x34   : > { %s1092_s25 = scalar_lea.hbm %s1228_s1, %s671_s16  ;;  %s237_s27 = scalar_lea.vmem [#allocation2], %s670_s14 }
  0x35   : > { %s244_s6 = sshll.u32 %s237_s27, 4  ;;  %p1098_p13 = pnand %p724_p12, %p1071_p6  ;;  %s1094_s6 = int_to_ptr.vmem [resolvable:$true] %s244_s6 }
  0x36   : > { %s234_s11 = scalar_lea.sflag [#allocation3], %s233_s7  ;;  %s823_s8 = scalar_lea.hbm %s1092_s25, 64 }
  0x37   : > { %p824_p0 = scmp.ne.s32.totalorder %s1092_s25, %s823_s8  ;;  %p825_p3 = pneg %p1098_p13 }
  0x38   : > { %s828_s17 = scalar_lea.hbm %s1228_s1, 128  ;;  %p829_p9 = scmp.lt.u32.totalorder %s1092_s25, %s1228_s1 }
  0x39   : > { %p826_p5 = pnand %p825_p3, %p824_p0  ;;  %p830_p1 = scmp.lt.u32.totalorder %s828_s17, %s823_s8 }
  0x3a   : > { %p832_p4 = scmp.lt.u32.totalorder %s823_s8, %s1092_s25 }
  0x3b   : > { %p827_p7 = pneg %p826_p5  ;;  %p831_p2 = por %p830_p1, %p829_p9 }
  0x3d   : > { %p833_p6 = por %p832_p4, %p831_p2 }
  0x3f   : > { %p834_p8 = pnand %p833_p6, %p827_p7 }
  0x41   : > { %837 = shalt.err (!%p834_p8)
}
  0x42   : > { %s838_s7 = scalar_lea.vmem %s1094_s6, 64  ;;  %s944_s27 = smov [#allocation2]  }
  0x43   : > { %p839_p12 = scmp.ne.s32.totalorder %s1094_s6, %s838_s7  ;;  %s843_s14 = sshll.u32 %s944_s27, 4  ;;  %s844_s14 = int_to_ptr.vmem [resolvable:$false] %s843_s14 }
  0x44   : > { %s845_s16 = scalar_lea.vmem %s844_s14, 128  ;;  %p846_p5 = scmp.lt.s32.totalorder %s1094_s6, %s844_s14 }
  0x45   : > { %p841_p11 = pnand %p839_p12, %p825_p3  ;;  %p847_p9 = scmp.lt.s32.totalorder %s845_s16, %s838_s7 }
  0x47   : > { %p842_p0 = pneg %p841_p11  ;;  %p848_p1 = por %p847_p9, %p846_p5 }
  0x49   : > { %p849_p2 = pnand %p848_p1, %p842_p0 }
  0x4b   : > { %852 = shalt.err (!%p849_p2)
}
  0x4c   : > { %718 = dma.hbm_to_vmem [thread:$0]  (!%p1098_p13), %s1092_s25, 64, %s1094_s6, %s234_s11  }
  0x4d   : > { %p1247_p7 = scmp.ne.s32.totalorder %s1241_s30, 0 }
  0x4e   : > { %s1130_s8 = sand.u32 (!%p1247_p7), 1, %s923_s19   ;;  %p1248_p3 = scmp.ne.s32.totalorder (!%p1247_p7), %s1239_s28, 0 }
  0x4f   : > { %266 = sbr.rel (%p1247_p7) target bundleno = 673 (0x2a1), region = 40  ;;  %s673_s17 = sshll.u32 (!%p1247_p7), %s1130_s8, 2 }
  0x50   : > { %s269_s12 = scalar_lea.sflag (!%p1247_p7), [#allocation3], %s1130_s8  ;;  %s1134_s24 = scalar_lea.vmem (!%p1247_p7), [#allocation2], %s673_s17 }
  0x56   : > { %906 = dma.done.wait (%p1248_p3), %s269_s12, 64  }
  0x57   : > { %908 = vsyncadd (%p1248_p3), %s269_s12, 4294967232  ;;  %p1249_p13 = scmp.ne.s32.totalorder %s1237_s26, 0 }
  0x59   : > { %910 = dma.done.wait (%p1249_p13), [#allocation6], 256  }
  0x5a   : > { %912 = vsyncadd (%p1249_p13), [#allocation6], 4294967040  ;;  %p322_p4 = scmp.lt.s32.totalorder %s931_s21, 1  ;;  %vm346_vm0 = vcmask 261120   ;;  %v945_v8 = vmov 0   ;;  %v379_v22 = vlaneseq  ;;  %v785_v51 = vld [vmem:[#allocation5] sm:$0xff]  }
  0x5b   : > { %783 = vset.pattern.permute.xlu0 %v945_v8  ;;  %784 = vset.pattern.permute.xlu1 %v945_v8  ;;  %v345_v29 = vld [vmem:[%s1134_s24] sm:$0xf]  ;;  %v946_v52 = vmov 0.0   ;;  %v786_v53 = vld [vmem:[#allocation5 + $0x8] sm:$0xff]   ;;  %vm947_vm3 = vmmov 0   ;;  %s675_s27 = sshll.u32 %s1130_s8, 4 }
  0x5c   : > { %s323_s30 = scalar_select %p322_p4, %s931_s21, 1  ;;  %v1156_v27 = vshrl.u32 %v379_v22, 7  ;;  %v378_v30 = vadd.f32 1.0, %v345_v29  ;;  %695 = vmatprep.subr.bf16.mxu0 %v946_v52  ;;  %699 = vmatprep.mubr.msk.bf16.mxu0 %vm947_vm3, %v946_v52 }
  0x5d   : > { %696 = vmatpush3.bf16.msra.mxu0 %v785_v51  ;;  %s320_s17 = scalar_lea.vmem [#allocation7], %s675_s27  ;;  %s691_s24 = sshll.u32 %s931_s21, 8 }
  0x5e   : > { %s689_s25 = sshll.u32 %s323_s30, 4  ;;  %v381_v31 = vsub.s32 1, %v1156_v27  ;;  %v387_v32 = vsub.s32 0, %v1156_v27  ;;  %697 = vmatprep.subr.bf16.mxu0 %v946_v52  ;;  %s535_s12 = sshll.u32 %s320_s17, 4  ;;  %s1173_s12 = int_to_ptr.vmem [resolvable:$true] %s535_s12 }
  0x5f   : > { %s329_s11 = scalar_lea.vmem %s1227_s0, %s689_s25  ;;  %s339_s7 = scalar_lea.vmem %s1229_s2, %s689_s25 }
  0x60   : > { %v343_v0 = vld [vmem:[%s329_s11] sm:$0xff]  ;;  %v344_v1 = vld [vmem:[%s329_s11 + $0x8] sm:$0xff]  ;;  %v382_v34 = vrot.slane %v378_v30, %v381_v31  ;;  %v388_v37 = vrot.slane %v345_v29, %v387_v32  ;;  %s1178_s6 = scalar_lea.hbm %s1232_s5, %s691_s24  ;;  %s520_s10 = scalar_lea.sflag [#allocation4], %s1130_s8 }
  0x61   : > { %v347_v2 = vsel %vm346_vm0, %v343_v0, 0.0  ;;  %v356_v3 = vmul.f32 %v343_v0, %v343_v0  ;;  %v357_v4 = vmul.f32 %v344_v1, %v344_v1  ;;  %v350_v6 = vsel %vm346_vm0, %v344_v1, 0.0  ;;  %v433_v9 = vld [vmem:[%s339_s7] sm:$0xff]  ;;  %v434_v11 = vld [vmem:[%s339_s7 + $0x8] sm:$0xff]  ;;  %698 = vmatpush3.bf16.msra.mxu0 %v786_v53  ;;  %s853_s21 = scalar_lea.vmem %s1173_s12, 256  ;;  %s948_s11 = smov [#allocation7]  }
  0x62   : > { %348 = vadd.xlane.f32.xlu0 %v347_v2  ;;  %vm435_vm1 = vcmp.gt.f32.partialorder %v433_v9, 0.0  ;;  %vm436_vm2 = vcmp.gt.f32.partialorder %v434_v11, 0.0  ;;  %p854_p6 = scmp.ne.s32.totalorder %s1173_s12, %s853_s21  ;;  %s857_s26 = sshll.u32 %s948_s11, 4  ;;  %s858_s26 = int_to_ptr.vmem [resolvable:$false] %s857_s26 }
  0x63   : > { %v358_v5 = vsel %vm346_vm0, %v356_v3, 0.0  ;;  %v361_v7 = vsel %vm346_vm0, %v357_v4, 0.0  ;;  %v437_v10 = vsel %vm435_vm1, 1, %v945_v8  ;;  %v438_v12 = vsel %vm436_vm2, 1, %v945_v8  ;;  %s859_s28 = scalar_lea.vmem %s858_s26, 512  ;;  %p860_p11 = scmp.lt.s32.totalorder %s1173_s12, %s858_s26 }
  0x64   : > { %359 = vadd.xlane.f32.xlu1 %v358_v5  ;;  %v423_v4 = vsub.s32 3, %v1156_v27  ;;  %p855_p8 = pnand %p854_p6, %p1077_p10  ;;  %p861_p0 = scmp.lt.s32.totalorder %s859_s28, %s853_s21 }
  0x66   : > { %351 = vadd.xlane.f32.xlu0 %v350_v6  ;;  %v424_v6 = vrot.slane %v378_v30, %v423_v4  ;;  %p856_p12 = pneg %p855_p8  ;;  %p862_p5 = por %p861_p0, %p860_p11 }
  0x68   : > { %362 = vadd.xlane.f32.xlu1 %v361_v7  ;;  %v429_v7 = vsub.s32 2, %v1156_v27  ;;  %p863_p9 = pnand %p862_p5, %p856_p12 }
  0xef   : > { %v349_v13 = vpop.xlane.xlu0 %348 }
  0xf0   : > { %v354_v14 = vmul.f32 0.03125, %v349_v13 }
  0xf1   : > { %v360_v15 = vpop.xlane.xlu1 %359 }
  0xf2   : > { %v366_v16 = vmul.f32 %v354_v14, %v354_v14  ;;  %v364_v17 = vmul.f32 0.03125, %v360_v15  ;;  %v370_v33 = vsub.f32 %v343_v0, %v354_v14 }
  0xf3   : > { %v352_v18 = vpop.xlane.xlu0 %351 }
  0xf4   : > { %v368_v19 = vsub.f32 %v364_v17, %v366_v16  ;;  %v355_v20 = vmul.f32 0.03125, %v352_v18 }
  0xf5   : > { %v363_v21 = vpop.xlane.xlu1 %362 }
  0xf6   : > { %v372_v23 = vadd.f32 1e-06, %v368_v19  ;;  %v367_v24 = vmul.f32 %v355_v20, %v355_v20  ;;  %v365_v25 = vmul.f32 0.03125, %v363_v21  ;;  %v371_v38 = vsub.f32 %v344_v1, %v355_v20 }
  0xf8   : > { %787 = vrsqrt.f32 %v372_v23  ;;  %v369_v26 = vsub.f32 %v365_v25, %v367_v24  ;;  %v680_v23 = vld [vmem:[%s1231_s4] ss:$0 sm:$0xff] }
  0xfa   : > { %v373_v28 = vadd.f32 1e-06, %v369_v26 }
  0xfc   : > { %789 = vrsqrt.f32 %v373_v28 }
 0x102   : > { %v788_v35 = vpop.eup %787 }
 0x103   : > { %v376_v36 = vmul.f32 %v788_v35, %v370_v33 }
 0x105   : > { %v383_v39 = vmul.f32 %v382_v34, %v376_v36 }
 0x106   : > { %v790_v40 = vpop.eup %789 }
 0x107   : > { %v389_v41 = vadd.f32 %v388_v37, %v383_v39  ;;  %v377_v42 = vmul.f32 %v790_v40, %v371_v38 }
 0x109   : > { %v391_v43 = vsel %vm346_vm0, %v389_v41, 0.0  ;;  %v399_v44 = vmul.f32 %v389_v41, %v389_v41  ;;  %v384_v45 = vmul.f32 %v382_v34, %v377_v42 }
 0x10a   : > { %392 = vadd.xlane.f32.xlu0 %v391_v43 }
 0x10b   : > { %v390_v46 = vadd.f32 %v388_v37, %v384_v45  ;;  %v401_v47 = vsel %vm346_vm0, %v399_v44, 0.0 }
 0x10d   : > { %v394_v48 = vsel %vm346_vm0, %v390_v46, 0.0  ;;  %v400_v49 = vmul.f32 %v390_v46, %v390_v46 }
 0x10e   : > { %402 = vadd.xlane.f32.xlu0 %v401_v47  ;;  %395 = vadd.xlane.f32.xlu1 %v394_v48 }
 0x10f   : > { %v404_v50 = vsel %vm346_vm0, %v400_v49, 0.0 }
 0x112   : > { %405 = vadd.xlane.f32.xlu1 %v404_v50 }
 0x123   : > { %443 = vperm.xlu1 %784, %v438_v12   ;;  %v430_v12 = vrot.slane %v345_v29, %v429_v7 }
 0x124   : > { %440 = vperm.xlu0 %783, %v437_v10  }
 0x197   : > { %v393_v54 = vpop.xlane.xlu0 %392 }
 0x198   : > { %v397_v55 = vmul.f32 0.03125, %v393_v54 }
 0x19a   : > { %v409_v58 = vmul.f32 %v397_v55, %v397_v55  ;;  %v413_v5 = vsub.f32 %v389_v41, %v397_v55 }
 0x19b   : > { %v396_v56 = vpop.xlane.xlu1 %395  ;;  %v403_v57 = vpop.xlane.xlu0 %402 }
 0x19c   : > { %v398_v59 = vmul.f32 0.03125, %v396_v56  ;;  %v407_v60 = vmul.f32 0.03125, %v403_v57 }
 0x19e   : > { %v411_v61 = vsub.f32 %v407_v60, %v409_v58  ;;  %v410_v63 = vmul.f32 %v398_v59, %v398_v59  ;;  %v414_v10 = vsub.f32 %v390_v46, %v398_v59 }
 0x19f   : > { %v406_v62 = vpop.xlane.xlu1 %405 }
 0x1a0   : > { %v415_v0 = vadd.f32 1e-06, %v411_v61  ;;  %v408_v1 = vmul.f32 0.03125, %v406_v62 }
 0x1a2   : > { %791 = vrsqrt.f32 %v415_v0  ;;  %v412_v2 = vsub.f32 %v408_v1, %v410_v63 }
 0x1a3   : > { %v441_v14 = vpop.permute.xlu0 %440  ;;  %v444_v16 = vpop.permute.xlu1 %443 }
 0x1a4   : > { %v416_v3 = vadd.f32 1e-06, %v412_v2  ;;  %vm445_vm4 = vcmp.eq.s32.totalorder %v441_v14, 1  ;;  %vm446_vm5 = vcmp.eq.s32.totalorder %v444_v16, 1 }
 0x1a6   : > { %793 = vrsqrt.f32 %v416_v3 }
 0x1ac   : > { %v792_v8 = vpop.eup %791 }
 0x1ad   : > { %v419_v9 = vmul.f32 %v792_v8, %v413_v5 }
 0x1af   : > { %v425_v11 = vmul.f32 %v424_v6, %v419_v9 }
 0x1b0   : > { %v794_v13 = vpop.eup %793 }
 0x1b1   : > { %v420_v15 = vmul.f32 %v794_v13, %v414_v10  ;;  %v431_v17 = vadd.f32 %v430_v12, %v425_v11 }
 0x1b3   : > { %v426_v18 = vmul.f32 %v424_v6, %v420_v15  ;;  %v447_v20 = vsel %vm445_vm4, %v389_v41, %v431_v17 }
 0x1b5   : > { %v432_v19 = vadd.f32 %v430_v12, %v426_v18 }
 0x1b7   : > { %v448_v21 = vsel %vm446_vm5, %v390_v46, %v432_v19 }
 0x1b8   : > { %v449_v22 = vpack.c.bf16 %v448_v21, %v447_v20 }
 0x1ba   : > { %700 = vmatmul.mubr.msk.bf16.vlgmr.msra.gmra.mrb[0].mxu0 %vm346_vm0, %v449_v22 }
 0x28d   : > { %v510_v24 = vpop.f32.mrb[0].mxu0 }
 0x28e   : > { %v511_v25 = vadd.f32 %v680_v23, %v510_v24  ;;  %v701_v26 = vpop.f32.mrb[1].mxu0 }
 0x28f   : > { %v513_v27 = vpop.f32.mrb[2].mxu0 }
 0x290   : > { %517 = vst [vmem:[%s320_s17] sm:$0xff] %v511_v25  ;;  %v514_v28 = vadd.f32 %v680_v23, %v513_v27  ;;  %v702_v29 = vpop.f32.mrb[3].mxu0 }
 0x292   : > { %518 = vst [vmem:[%s320_s17 + $0x8] sm:$0xff] %v514_v28 }
 0x293   : > { %866 = shalt.err (!%p863_p9)
}
 0x294   : > { %s867_s7 = scalar_lea.hbm %s1178_s6, 256  ;;  %s871_s16 = scalar_lea.hbm %s1232_s5, 512 }
 0x295   : > { %p868_p1 = scmp.ne.s32.totalorder %s1178_s6, %s867_s7  ;;  %p872_p3 = scmp.lt.u32.totalorder %s1178_s6, %s1232_s5 }
 0x296   : > { %p873_p13 = scmp.lt.u32.totalorder %s871_s16, %s867_s7  ;;  %p875_p6 = scmp.lt.u32.totalorder %s867_s7, %s1178_s6 }
 0x297   : > { %p869_p2 = pnand %p868_p1, %p1077_p10 }
 0x298   : > { %p874_p4 = por %p873_p13, %p872_p3 }
 0x299   : > { %p870_p7 = pneg %p869_p2 }
 0x29a   : > { %p876_p8 = por %p875_p6, %p874_p4 }
 0x29c   : > { %p877_p12 = pnand %p876_p8, %p870_p7 }
 0x29e   : > { %880 = shalt.err (!%p877_p12)
}
 0x29f   : > { %s949_s30 = smov 128   ;;  %s950_s25 = smov 8  }
 0x2a0   : > { %709 = dma.vmem_to_hbm [thread:$0]  (%p1077_p10), %s1173_s12, 256, %s1178_s6, %s520_s10, %s949_s30, %s949_s30, %s950_s25  }
 0x2a1 PF: > { %s550_s21 = sand.u32 1, %s919_s18   ;;  %p1250_p11 = scmp.ne.s32.totalorder %s1240_s29, 0 }
 0x2a2   : > { %p1251_p0 = scmp.ge.s32.totalorder %s939_s23, 2  ;;  %s551_s11 = scalar_lea.sflag [#allocation4], %s550_s21 }
 0x2a4   : > { %p720_p5 = pnand %p1251_p0, %p1250_p11 }
 0x2a6   : > { %914 = dma.done.wait (!%p720_p5), %s551_s11, 256  }
 0x2a7   : > { %916 = vsyncadd (!%p720_p5), %s551_s11, 4294967040  ;;  %s22_s23 = sadd.s32 1, %s939_s23   ;;  %s1252_s18 = smov %s923_s19 }
 0x2a8   : > { %p19_p9 = scmp.ge.s32.totalorder %s22_s23, 4   ;;  %s1253_s19 = smov %s927_s20 }
 0x2a9   : > { %s1254_s20 = smov %s1086_s15  ;;  %s1255_s21 = smov %s935_s22 }
 0x2aa   : > { %s1256_s22 = smov %s1258_s9  ;;  %21 = sbr.rel (!%p19_p9) target bundleno = 7 (0x7), region = 95 }
 0x2b1   :  { %556 = vsyncpa [#allocation3], 1 }
 0x2b2   :  { %558 = vsyncpa [#allocation3 + $0x1], 1 }
 0x2b3   :  { %559 = vsyncpa [#allocation6], 1 }
 0x2b4   :  { %560 = vsyncpa [#allocation4], 1 }
 0x2b5   :  { %562 = vsyncpa [#allocation4 + $0x1], 1 }

</bundles_post_ra>
